<compile_context>
chip_gen: v5e
topology: v5e:2x2
jax: 0.10.0
libtpu: 0.0.40
codegen_flags: <defaults>
</compile_context>

<pallas_src>
import functools

import numpy as np

import jax
import jax.numpy as jnp
from jax import lax
from jax.experimental import pallas as pl
from jax.experimental.pallas import tpu as pltpu

SELU_ALPHA = 1.6732632423543772848170429916717
SELU_SCALE = 1.0507009873554804934193349852946


# --------------------------------------------------------------------------
# Pallas kernels
# --------------------------------------------------------------------------

def _fused_gate_kernel(zp_ref, mask_ref,
                       w1sq_ref, b1sq_ref, w1ex_ref, b1ex_ref,
                       w2sq_ref, b2sq_ref, w2ex_ref, b2ex_ref,
                       gamma_ref, beta_ref,
                       s1_scr, s2_scr,
                       *, wp, l1, l2, inv_count, c_out):
    """Whole merged (mul|add) gate network for one batch element, fully VMEM-resident.

    Activations are kept flat as (C, flat) with the flat index row-major over the padded
    width `wp`; a 3x3 'valid' conv tap (ky, kx) is then just the lane slice starting at
    ky*wp + kx ("over-wide" trick).  Columns past a row's valid width carry garbage but
    never feed valid downstream positions; the final global mean masks them out.
    """
    zp = zp_ref[0]                                                # (Cz, Hp*Wp) f32

    # fire1 squeeze (1x1 conv == matmul), merged [mul | add] rows, + ReLU.
    s1_scr[...] = jnp.maximum(
        jnp.dot(w1sq_ref[...], zp, preferred_element_type=jnp.float32)
        + b1sq_ref[...], 0.0)

    # fire1 expand: 3x3 'valid' conv with the 1x1 expand folded onto the centre tap.
    c1 = w1ex_ref.shape[1]
    acc = jnp.zeros((c1, l1), jnp.float32)
    for t in range(9):                                            # static unroll, 9 taps
        off = (t // 3) * wp + (t % 3)
        acc = acc + jnp.dot(w1ex_ref[t], s1_scr[:, off:off + l1],
                            preferred_element_type=jnp.float32)
    # SELU(ReLU(y)) == SELU_SCALE * ReLU(y) exactly (ReLU output is >= 0).
    y1 = SELU_SCALE * jnp.maximum(acc + b1ex_ref[...], 0.0)       # (2*in_z, l1)

    # fire2 squeeze (block-diagonal merged) + ReLU.
    s2_scr[...] = jnp.maximum(
        jnp.dot(w2sq_ref[...], y1, preferred_element_type=jnp.float32)
        + b2sq_ref[...], 0.0)

    # fire2 expand (same 9-tap shifted-read accumulation).
    c2 = w2ex_ref.shape[1]
    acc2 = jnp.zeros((c2, l2), jnp.float32)
    for t in range(9):
        off = (t // 3) * wp + (t % 3)
        acc2 = acc2 + jnp.dot(w2ex_ref[t], s2_scr[:, off:off + l2],
                              preferred_element_type=jnp.float32)
    g = jnp.maximum(acc2 + b2ex_ref[...], 0.0)                    # (2*in_x, l2)

    # AvgPool2d(1000, ceil_mode=True) == exact global mean over the Hz*Wz valid pixels.
    means = jnp.sum(g * mask_ref[...], axis=-1, keepdims=True) * inv_count   # (2*in_x, 1)
    gamma_ref[0] = 3.0 / (1.0 + jnp.exp(-means[:c_out]))          # sigmoid * 3 (mul gate)
    beta_ref[0] = means[c_out:]                                   # add gate


def _adain_kernel(x_ref, gamma_ref, beta_ref, o_ref):
    """InstanceNorm2d(affine=False, eps=1e-5) * gamma + beta, one batch element."""
    x = x_ref[0].astype(jnp.float32)                              # (C, H*W), lane-dense
    mu = jnp.mean(x, axis=-1, keepdims=True)
    var = jnp.mean(jnp.square(x - mu), axis=-1, keepdims=True)    # biased, as PyTorch
    inv = lax.rsqrt(var + 1e-5)
    o_ref[0] = ((x - mu) * (inv * gamma_ref[0]) + beta_ref[0]).astype(o_ref.dtype)


# --------------------------------------------------------------------------
# Wrappers around pallas_call
# --------------------------------------------------------------------------

def merged_gate_pool(z, mp):
    """Run both gates fused; return (gamma, beta), each (N, in_x, 1), float32."""
    n, cz, hz, wz = z.shape
    # AvgPool2d(1000, ceil_mode=True) == global mean only while spatial extent < 1000.
    assert hz < 1000 and wz < 1000, "gate pooling assumes spatial extent < 1000"
    assert hz >= 3 and wz >= 3, "ReflectionPad2d(2) needs spatial extent >= 3"
    hp, wp = hz + 4, wz + 4
    l1 = (hz + 2) * wp - 2          # over-wide fire1-expand flat grid length
    l2 = hz * wp - 4                # over-wide fire2-expand flat grid length

    # ReflectionPad2d(2): tiny one-off XLA glue (a few KiB); everything else is in-kernel.
    zp = jnp.pad(z, ((0, 0), (0, 0), (2, 2), (2, 2)), mode="reflect")
    zp = zp.reshape(n, cz, hp * wp)

    # Validity mask of the over-wide fire2 grid (column index < Wz), built at trace time.
    mask = jnp.asarray((np.arange(l2) % wp < wz).astype(np.float32)).reshape(1, l2)

    csq1 = mp["f1_sq_w"].shape[0]
    csq2 = mp["f2_sq_w"].shape[0]
    cx = mp["f2_ex_w"].shape[1] // 2          # = in_x

    kernel = functools.partial(_fused_gate_kernel, wp=wp, l1=l1, l2=l2,
                               inv_count=1.0 / float(hz * wz), c_out=cx)
    gamma, beta = pl.pallas_call(
        kernel,
        out_shape=(jax.ShapeDtypeStruct((n, cx, 1), jnp.float32),
                   jax.ShapeDtypeStruct((n, cx, 1), jnp.float32)),
        grid=(n,),
        in_specs=[
            pl.BlockSpec((1, cz, hp * wp), lambda b: (b, 0, 0)),
            pl.BlockSpec((1, l2), lambda b: (0, 0)),
            pl.BlockSpec(mp["f1_sq_w"].shape, lambda b: (0, 0)),
            pl.BlockSpec(mp["f1_sq_b"].shape, lambda b: (0, 0)),
            pl.BlockSpec(mp["f1_ex_w"].shape, lambda b: (0, 0, 0)),
            pl.BlockSpec(mp["f1_ex_b"].shape, lambda b: (0, 0)),
            pl.BlockSpec(mp["f2_sq_w"].shape, lambda b: (0, 0)),
            pl.BlockSpec(mp["f2_sq_b"].shape, lambda b: (0, 0)),
            pl.BlockSpec(mp["f2_ex_w"].shape, lambda b: (0, 0, 0)),
            pl.BlockSpec(mp["f2_ex_b"].shape, lambda b: (0, 0)),
        ],
        out_specs=(pl.BlockSpec((1, cx, 1), lambda b: (b, 0, 0)),
                   pl.BlockSpec((1, cx, 1), lambda b: (b, 0, 0))),
        scratch_shapes=[pltpu.VMEM((csq1, hp * wp), jnp.float32),
                        pltpu.VMEM((csq2, l1), jnp.float32)],
        compiler_params=pltpu.CompilerParams(dimension_semantics=("parallel",)),
    )(zp, mask,
      mp["f1_sq_w"], mp["f1_sq_b"], mp["f1_ex_w"], mp["f1_ex_b"],
      mp["f2_sq_w"], mp["f2_sq_b"], mp["f2_ex_w"], mp["f2_ex_b"])
    return gamma, beta


def adain_modulate(x, gamma, beta):
    """Fused InstanceNorm2d + per-channel scale/shift; one lane-dense block per batch."""
    n, c, h, w = x.shape
    # TODO(synk): for production-size feature maps (C*H*W*4B approaching v7x's 64 MiB
    # VMEM), switch to a spatially tiled two-pass variant (stats accumulation + normalize).
    out = pl.pallas_call(
        _adain_kernel,
        out_shape=jax.ShapeDtypeStruct((n, c, h * w), x.dtype),
        grid=(n,),
        in_specs=[pl.BlockSpec((1, c, h * w), lambda b: (b, 0, 0)),
                  pl.BlockSpec((1, c, 1), lambda b: (b, 0, 0)),
                  pl.BlockSpec((1, c, 1), lambda b: (b, 0, 0))],
        out_specs=pl.BlockSpec((1, c, h * w), lambda b: (b, 0, 0)),
        compiler_params=pltpu.CompilerParams(dimension_semantics=("parallel",)),
    )(x.reshape(n, c, h * w), gamma, beta)
    return out.reshape(n, c, h, w)


def adaptive_instance_norm(x, z, merged_params):
    # TODO(synk): nn.Dropout(p=0.25) is stochastic in train mode; eval-mode identity here.
    gamma, beta = merged_gate_pool(z, merged_params)
    return adain_modulate(x, gamma, beta)


# --------------------------------------------------------------------------
# Deterministic parameter init (PyTorch-Conv2d-style uniform bounds) + weight merging
# --------------------------------------------------------------------------

def _init_conv(key, cout, cin, k):
    k1, k2 = jax.random.split(key)
    bound = 1.0 / float(cin * k * k) ** 0.5
    w = jax.random.uniform(k1, (cout, cin, k, k), jnp.float32, -bound, bound)
    b = jax.random.uniform(k2, (cout,), jnp.float32, -bound, bound)
    return w, b


def _init_fire(key, inplanes, sq, e1, e3):
    ks = jax.random.split(key, 3)
    sw, sb = _init_conv(ks[0], sq, inplanes, 1)
    e1w, e1b = _init_conv(ks[1], e1, sq, 1)
    e3w, e3b = _init_conv(ks[2], e3, sq, 3)
    return {"squeeze_w": sw[:, :, 0, 0], "squeeze_b": sb,
            "e1_w": e1w[:, :, 0, 0], "e1_b": e1b,
            "e3_w": e3w, "e3_b": e3b}


def _init_gate(key, in_z, in_x):
    k1, k2 = jax.random.split(key)
    return {"fire1": _init_fire(k1, in_z, in_z // 2, in_z // 2, in_z // 2),
            "fire2": _init_fire(k2, in_z, in_z // 2, in_x // 2, in_x // 2)}


def init_adain_params(key, in_x, in_z):
    k1, k2 = jax.random.split(key)
    return {"mul_gate": _init_gate(k1, in_z, in_x),
            "add_gate": _init_gate(k2, in_z, in_x)}


def _merge_expand_taps(fm, fa):
    """Merged expand weight, tap-leading: (9, [mul_e1|mul_e3|add_e1|add_e3], [mul_sq|add_sq]).

    The 1x1 expand is folded onto the centre tap (ky=kx=1, t=4); mul rows read squeeze
    cols [0:sqm], add rows read [sqm:], matching the block-diagonal squeeze layout.
    """
    e1m, sqm = fm["e1_w"].shape
    e3m = fm["e3_w"].shape[0]
    e1a, sqa = fa["e1_w"].shape
    e3a = fa["e3_w"].shape[0]
    csq = sqm + sqa
    cout = e1m + e3m + e1a + e3a
    w = jnp.zeros((9, cout, csq), jnp.float32)
    w = w.at[4, 0:e1m, 0:sqm].set(fm["e1_w"])                       # 1x1 -> centre tap
    w = w.at[:, e1m:e1m + e3m, 0:sqm].set(
        jnp.transpose(fm["e3_w"], (2, 3, 0, 1)).reshape(9, e3m, sqm))
    off = e1m + e3m
    w = w.at[4, off:off + e1a, sqm:].set(fa["e1_w"])
    w = w.at[:, off + e1a:off + e1a + e3a, sqm:].set(
        jnp.transpose(fa["e3_w"], (2, 3, 0, 1)).reshape(9, e3a, sqa))
    b = jnp.concatenate([fm["e1_b"], fm["e3_b"], fa["e1_b"], fa["e3_b"]])
    return w, b.reshape(cout, 1)


def _merge_squeeze_blockdiag(fm, fa):
    wm, wa = fm["squeeze_w"], fa["squeeze_w"]
    sqm, cinm = wm.shape
    sqa, cina = wa.shape
    w = jnp.zeros((sqm + sqa, cinm + cina), jnp.float32)
    w = w.at[0:sqm, 0:cinm].set(wm)
    w = w.at[sqm:, cinm:].set(wa)
    b = jnp.concatenate([fm["squeeze_b"], fa["squeeze_b"]])
    return w, b.reshape(-1, 1)


def prepare_merged_params(params):
    """Merge mul_gate/add_gate weights so the whole gate network is 4 in-kernel matmul stages."""
    f1m, f1a = params["mul_gate"]["fire1"], params["add_gate"]["fire1"]
    f2m, f2a = params["mul_gate"]["fire2"], params["add_gate"]["fire2"]
    f1_ex_w, f1_ex_b = _merge_expand_taps(f1m, f1a)
    f2_sq_w, f2_sq_b = _merge_squeeze_blockdiag(f2m, f2a)
    f2_ex_w, f2_ex_b = _merge_expand_taps(f2m, f2a)
    return {
        # fire1 squeeze: both gates read the same padded z -> plain row concat.
        "f1_sq_w": jnp.concatenate([f1m["squeeze_w"], f1a["squeeze_w"]], axis=0),
        "f1_sq_b": jnp.concatenate([f1m["squeeze_b"], f1a["squeeze_b"]]).reshape(-1, 1),
        "f1_ex_w": f1_ex_w, "f1_ex_b": f1_ex_b,
        "f2_sq_w": f2_sq_w, "f2_sq_b": f2_sq_b,
        "f2_ex_w": f2_ex_w, "f2_ex_b": f2_ex_b,
    }


# --------------------------------------------------------------------------
# Pure-JAX reference (un-merged, per-gate) for the correctness check
# --------------------------------------------------------------------------

def _ref_conv1x1(x, w, b):
    return jnp.einsum("nchw,oc->nohw", x, w) + b[None, :, None, None]


def _ref_conv3x3(x, w, b):
    y = lax.conv_general_dilated(x, w, (1, 1), "VALID",
                                 dimension_numbers=("NCHW", "OIHW", "NCHW"))
    return y + b[None, :, None, None]


def _ref_fire(x, p):
    s = jax.nn.relu(_ref_conv1x1(x, p["squeeze_w"], p["squeeze_b"]))
    e1 = jax.nn.relu(_ref_conv1x1(s[:, :, 1:-1, 1:-1], p["e1_w"], p["e1_b"]))
    e3 = jax.nn.relu(_ref_conv3x3(s, p["e3_w"], p["e3_b"]))
    return jnp.concatenate([e1, e3], axis=1)


def _ref_gate(z, gp):
    y = jnp.pad(z, ((0, 0), (0, 0), (2, 2), (2, 2)), mode="reflect")
    y = _ref_fire(y, gp["fire1"])
    y = SELU_SCALE * jnp.where(y > 0, y, SELU_ALPHA * (jnp.exp(y) - 1.0))
    return _ref_fire(y, gp["fire2"])


def _ref_adain(x, z, params):
    g = _ref_gate(z, params["mul_gate"])
    a = _ref_gate(z, params["add_gate"])
    gamma = jax.nn.sigmoid(jnp.mean(g, axis=(2, 3), keepdims=True)) * 3.0
    beta = jnp.mean(a, axis=(2, 3), keepdims=True)
    mu = jnp.mean(x, axis=(2, 3), keepdims=True)
    var = jnp.mean((x - mu) ** 2, axis=(2, 3), keepdims=True)
    return (x - mu) * lax.rsqrt(var + 1e-5) * gamma + beta


# --------------------------------------------------------------------------

if __name__ == "__main__":
    key = jax.random.PRNGKey(0)
    kx, kz, kp = jax.random.split(key, 3)

    in_x, in_z = 4, 4
    x = jax.random.normal(kx, (2, in_x, 16, 16), jnp.float32)   # content features
    z = jax.random.normal(kz, (2, in_z, 8, 8), jnp.float32)     # style / conditioning

    params = init_adain_params(kp, in_x, in_z)
    merged = prepare_merged_params(params)

    out = jax.jit(adaptive_instance_norm)(x, z, merged)
    out = jax.block_until_ready(out)
    assert out.shape == x.shape and out.dtype == x.dtype

    ref = _ref_adain(x, z, params)
    err = float(jnp.max(jnp.abs(out - ref)))
    # 4x tighter than the previous check: any weight-merge / layout / shift bug produces
    # O(0.1+) error, while the only legitimate deviation left is MXU f32 multi-pass
    # rounding through the four matmul stages feeding gamma/beta.
    assert err < 5e-3, f"mismatch vs pure-JAX reference: max abs err = {err}"
    print("KERNEL_OK")
</pallas_src>

<mosaic_0001>
module attributes {stable_mosaic.version = 11 : i64} {
  func.func @_adain_kernel(%arg0: i32, %arg1: memref<1x4x256xf32, #tpu.memory_space<vmem>>, %arg2: memref<1x4x1xf32, #tpu.memory_space<vmem>>, %arg3: memref<1x4x1xf32, #tpu.memory_space<vmem>>, %arg4: memref<1x4x256xf32, #tpu.memory_space<vmem>>) attributes {dimension_semantics = [#tpu.dimension_semantics<parallel>], iteration_bounds = array<i64: 2>, scalar_prefetch = 0 : i64, scratch_operands = 0 : i64, tpu.core_type = #tpu.core_type<tc>, window_params = [{transform_indices = @transform_0, window_bounds = array<i64: 1, 4, 256>}, {transform_indices = @transform_1, window_bounds = array<i64: 1, 4, 1>}, {transform_indices = @transform_2, window_bounds = array<i64: 1, 4, 1>}, {transform_indices = @transform_3, window_bounds = array<i64: 1, 4, 256>}]} {
    %c0 = arith.constant 0 : index
    %c0_0 = arith.constant 0 : index
    %c0_1 = arith.constant 0 : index
    %0 = vector.load %arg1[%c0, %c0_0, %c0_1] : memref<1x4x256xf32, #tpu.memory_space<vmem>>, vector<1x4x256xf32>
    %1 = vector.shape_cast %0 : vector<1x4x256xf32> to vector<4x256xf32>
    %cst = arith.constant dense<0.000000e+00> : vector<4xf32>
    %2 = vector.multi_reduction <add>, %1, %cst [1] : vector<4x256xf32> to vector<4xf32>
    %3 = vector.shape_cast %2 : vector<4xf32> to vector<4x1xf32>
    %cst_2 = arith.constant 2.560000e+02 : f32
    %4 = vector.broadcast %cst_2 : f32 to vector<4x1xf32>
    %5 = arith.divf %3, %4 : vector<4x1xf32>
    %6 = vector.broadcast %5 : vector<4x1xf32> to vector<4x256xf32>
    %7 = arith.subf %1, %6 : vector<4x256xf32>
    %8 = arith.mulf %7, %7 : vector<4x256xf32>
    %cst_3 = arith.constant dense<0.000000e+00> : vector<4xf32>
    %9 = vector.multi_reduction <add>, %8, %cst_3 [1] : vector<4x256xf32> to vector<4xf32>
    %10 = vector.shape_cast %9 : vector<4xf32> to vector<4x1xf32>
    %cst_4 = arith.constant 2.560000e+02 : f32
    %11 = vector.broadcast %cst_4 : f32 to vector<4x1xf32>
    %12 = arith.divf %10, %11 : vector<4x1xf32>
    %cst_5 = arith.constant 9.99999974E-6 : f32
    %13 = vector.broadcast %cst_5 : f32 to vector<4x1xf32>
    %14 = arith.addf %12, %13 : vector<4x1xf32>
    %15 = math.rsqrt %14 : vector<4x1xf32>
    %16 = vector.broadcast %5 : vector<4x1xf32> to vector<4x256xf32>
    %17 = arith.subf %1, %16 : vector<4x256xf32>
    %c0_6 = arith.constant 0 : index
    %c0_7 = arith.constant 0 : index
    %c0_8 = arith.constant 0 : index
    %18 = vector.load %arg2[%c0_6, %c0_7, %c0_8] : memref<1x4x1xf32, #tpu.memory_space<vmem>>, vector<1x4x1xf32>
    %19 = vector.shape_cast %18 : vector<1x4x1xf32> to vector<4x1xf32>
    %20 = arith.mulf %15, %19 : vector<4x1xf32>
    %21 = vector.broadcast %20 : vector<4x1xf32> to vector<4x256xf32>
    %22 = arith.mulf %17, %21 : vector<4x256xf32>
    %c0_9 = arith.constant 0 : index
    %c0_10 = arith.constant 0 : index
    %c0_11 = arith.constant 0 : index
    %23 = vector.load %arg3[%c0_9, %c0_10, %c0_11] : memref<1x4x1xf32, #tpu.memory_space<vmem>>, vector<1x4x1xf32>
    %24 = vector.shape_cast %23 : vector<1x4x1xf32> to vector<4x1xf32>
    %25 = vector.broadcast %24 : vector<4x1xf32> to vector<4x256xf32>
    %26 = arith.addf %22, %25 : vector<4x256xf32>
    %c0_12 = arith.constant 0 : index
    %c0_13 = arith.constant 0 : index
    %c0_14 = arith.constant 0 : index
    %27 = vector.load %arg4[%c0_12, %c0_13, %c0_14] : memref<1x4x256xf32, #tpu.memory_space<vmem>>, vector<1x4x256xf32>
    %28 = vector.shape_cast %27 : vector<1x4x256xf32> to vector<4x256xf32>
    %29 = vector.shape_cast %26 : vector<4x256xf32> to vector<1x4x256xf32>
    tpu.vector_store %arg4[%c0_12, %c0_13, %c0_14], %29 {strides = array<i32>} : memref<1x4x256xf32, #tpu.memory_space<vmem>>, vector<1x4x256xf32>,
    return
  }
  func.func @transform_0(%arg0: i32) -> (i32, i32, i32) {
    %c0_i32 = arith.constant 0 : i32
    %c0_i32_0 = arith.constant 0 : i32
    %c0_i32_1 = arith.constant 0 : i32
    return %arg0, %c0_i32, %c0_i32_0 : i32, i32, i32
  }
  func.func @transform_1(%arg0: i32) -> (i32, i32, i32) {
    %c0_i32 = arith.constant 0 : i32
    %c0_i32_0 = arith.constant 0 : i32
    %c0_i32_1 = arith.constant 0 : i32
    return %arg0, %c0_i32, %c0_i32_0 : i32, i32, i32
  }
  func.func @transform_2(%arg0: i32) -> (i32, i32, i32) {
    %c0_i32 = arith.constant 0 : i32
    %c0_i32_0 = arith.constant 0 : i32
    %c0_i32_1 = arith.constant 0 : i32
    return %arg0, %c0_i32, %c0_i32_0 : i32, i32, i32
  }
  func.func @transform_3(%arg0: i32) -> (i32, i32, i32) {
    %c0_i32 = arith.constant 0 : i32
    %c0_i32_0 = arith.constant 0 : i32
    %c0_i32_1 = arith.constant 0 : i32
    return %arg0, %c0_i32, %c0_i32_0 : i32, i32, i32
  }
}

module attributes {stable_mosaic.version = 11 : i64} {
  func.func @_fused_gate_kernel(%arg0: i32, %arg1: memref<1x4x144xf32, #tpu.memory_space<vmem>>, %arg2: memref<1x92xf32, #tpu.memory_space<vmem>>, %arg3: memref<4x4xf32, #tpu.memory_space<vmem>>, %arg4: memref<4x1xf32, #tpu.memory_space<vmem>>, %arg5: memref<9x8x4xf32, #tpu.memory_space<vmem>>, %arg6: memref<8x1xf32, #tpu.memory_space<vmem>>, %arg7: memref<4x8xf32, #tpu.memory_space<vmem>>, %arg8: memref<4x1xf32, #tpu.memory_space<vmem>>, %arg9: memref<9x8x4xf32, #tpu.memory_space<vmem>>, %arg10: memref<8x1xf32, #tpu.memory_space<vmem>>, %arg11: memref<1x4x1xf32, #tpu.memory_space<vmem>>, %arg12: memref<1x4x1xf32, #tpu.memory_space<vmem>>, %arg13: memref<4x144xf32, #tpu.memory_space<vmem>>, %arg14: memref<4x118xf32, #tpu.memory_space<vmem>>) attributes {dimension_semantics = [#tpu.dimension_semantics<parallel>], iteration_bounds = array<i64: 2>, scalar_prefetch = 0 : i64, scratch_operands = 2 : i64, tpu.core_type = #tpu.core_type<tc>, window_params = [{transform_indices = @transform_0, window_bounds = array<i64: 1, 4, 144>}, {pipeline_mode = #tpu.pipeline_mode<synchronous>, transform_indices = @transform_1, window_bounds = array<i64: 1, 92>}, {pipeline_mode = #tpu.pipeline_mode<synchronous>, transform_indices = @transform_2, window_bounds = array<i64: 4, 4>}, {pipeline_mode = #tpu.pipeline_mode<synchronous>, transform_indices = @transform_3, window_bounds = array<i64: 4, 1>}, {pipeline_mode = #tpu.pipeline_mode<synchronous>, transform_indices = @transform_4, window_bounds = array<i64: 9, 8, 4>}, {pipeline_mode = #tpu.pipeline_mode<synchronous>, transform_indices = @transform_5, window_bounds = array<i64: 8, 1>}, {pipeline_mode = #tpu.pipeline_mode<synchronous>, transform_indices = @transform_6, window_bounds = array<i64: 4, 8>}, {pipeline_mode = #tpu.pipeline_mode<synchronous>, transform_indices = @transform_7, window_bounds = array<i64: 4, 1>}, {pipeline_mode = #tpu.pipeline_mode<synchronous>, transform_indices = @transform_8, window_bounds = array<i64: 9, 8, 4>}, {pipeline_mode = #tpu.pipeline_mode<synchronous>, transform_indices = @transform_9, window_bounds = array<i64: 8, 1>}, {transform_indices = @transform_10, window_bounds = array<i64: 1, 4, 1>}, {transform_indices = @transform_11, window_bounds = array<i64: 1, 4, 1>}]} {
    %c0 = arith.constant 0 : index
    %c0_0 = arith.constant 0 : index
    %c0_1 = arith.constant 0 : index
    %0 = vector.load %arg1[%c0, %c0_0, %c0_1] : memref<1x4x144xf32, #tpu.memory_space<vmem>>, vector<1x4x144xf32>
    %1 = vector.shape_cast %0 : vector<1x4x144xf32> to vector<4x144xf32>
    %c0_2 = arith.constant 0 : index
    %c0_3 = arith.constant 0 : index
    %2 = vector.load %arg3[%c0_2, %c0_3] : memref<4x4xf32, #tpu.memory_space<vmem>>, vector<4x4xf32>
    %cst = arith.constant dense<0.000000e+00> : vector<4x144xf32>
    %3 = tpu.matmul %2, %1, %cst {dimension_numbers = #tpu.dot_dimension_numbers<[1], [0], [0], [1], [0, 0, 1, 1], [], []>} : vector<4x4xf32>, vector<4x144xf32>, vector<4x144xf32> -> vector<4x144xf32>
    %c0_4 = arith.constant 0 : index
    %c0_5 = arith.constant 0 : index
    %4 = vector.load %arg4[%c0_4, %c0_5] : memref<4x1xf32, #tpu.memory_space<vmem>>, vector<4x1xf32>
    %5 = vector.broadcast %4 : vector<4x1xf32> to vector<4x144xf32>
    %6 = arith.addf %3, %5 : vector<4x144xf32>
    %cst_6 = arith.constant 0.000000e+00 : f32
    %7 = vector.broadcast %cst_6 : f32 to vector<4x144xf32>
    %8 = arith.maximumf %6, %7 : vector<4x144xf32>
    %c0_7 = arith.constant 0 : index
    %c0_8 = arith.constant 0 : index
    %9 = vector.load %arg13[%c0_7, %c0_8] : memref<4x144xf32, #tpu.memory_space<vmem>>, vector<4x144xf32>
    tpu.vector_store %arg13[%c0_7, %c0_8], %8 {strides = array<i32>} : memref<4x144xf32, #tpu.memory_space<vmem>>, vector<4x144xf32>,
    %cst_9 = arith.constant 0.000000e+00 : f32
    %10 = vector.broadcast %cst_9 : f32 to vector<8x118xf32>
    %c0_10 = arith.constant 0 : index
    %c0_11 = arith.constant 0 : index
    %c0_12 = arith.constant 0 : index
    %11 = vector.load %arg5[%c0_10, %c0_11, %c0_12] : memref<9x8x4xf32, #tpu.memory_space<vmem>>, vector<1x8x4xf32>
    %12 = vector.shape_cast %11 : vector<1x8x4xf32> to vector<8x4xf32>
    %c0_13 = arith.constant 0 : index
    %c0_14 = arith.constant 0 : index
    %13 = vector.load %arg13[%c0_13, %c0_14] : memref<4x144xf32, #tpu.memory_space<vmem>>, vector<4x118xf32>
    %cst_15 = arith.constant dense<0.000000e+00> : vector<8x118xf32>
    %14 = tpu.matmul %12, %13, %cst_15 {dimension_numbers = #tpu.dot_dimension_numbers<[1], [0], [0], [1], [0, 0, 1, 1], [], []>} : vector<8x4xf32>, vector<4x118xf32>, vector<8x118xf32> -> vector<8x118xf32>
    %15 = arith.addf %10, %14 : vector<8x118xf32>
    %c1 = arith.constant 1 : index
    %c0_16 = arith.constant 0 : index
    %c0_17 = arith.constant 0 : index
    %16 = vector.load %arg5[%c1, %c0_16, %c0_17] : memref<9x8x4xf32, #tpu.memory_space<vmem>>, vector<1x8x4xf32>
    %17 = vector.shape_cast %16 : vector<1x8x4xf32> to vector<8x4xf32>
    %c0_18 = arith.constant 0 : index
    %c1_19 = arith.constant 1 : index
    %18 = vector.load %arg13[%c0_18, %c1_19] : memref<4x144xf32, #tpu.memory_space<vmem>>, vector<4x118xf32>
    %cst_20 = arith.constant dense<0.000000e+00> : vector<8x118xf32>
    %19 = tpu.matmul %17, %18, %cst_20 {dimension_numbers = #tpu.dot_dimension_numbers<[1], [0], [0], [1], [0, 0, 1, 1], [], []>} : vector<8x4xf32>, vector<4x118xf32>, vector<8x118xf32> -> vector<8x118xf32>
    %20 = arith.addf %15, %19 : vector<8x118xf32>
    %c2 = arith.constant 2 : index
    %c0_21 = arith.constant 0 : index
    %c0_22 = arith.constant 0 : index
    %21 = vector.load %arg5[%c2, %c0_21, %c0_22] : memref<9x8x4xf32, #tpu.memory_space<vmem>>, vector<1x8x4xf32>
    %22 = vector.shape_cast %21 : vector<1x8x4xf32> to vector<8x4xf32>
    %c0_23 = arith.constant 0 : index
    %c2_24 = arith.constant 2 : index
    %23 = vector.load %arg13[%c0_23, %c2_24] : memref<4x144xf32, #tpu.memory_space<vmem>>, vector<4x118xf32>
    %cst_25 = arith.constant dense<0.000000e+00> : vector<8x118xf32>
    %24 = tpu.matmul %22, %23, %cst_25 {dimension_numbers = #tpu.dot_dimension_numbers<[1], [0], [0], [1], [0, 0, 1, 1], [], []>} : vector<8x4xf32>, vector<4x118xf32>, vector<8x118xf32> -> vector<8x118xf32>
    %25 = arith.addf %20, %24 : vector<8x118xf32>
    %c3 = arith.constant 3 : index
    %c0_26 = arith.constant 0 : index
    %c0_27 = arith.constant 0 : index
    %26 = vector.load %arg5[%c3, %c0_26, %c0_27] : memref<9x8x4xf32, #tpu.memory_space<vmem>>, vector<1x8x4xf32>
    %27 = vector.shape_cast %26 : vector<1x8x4xf32> to vector<8x4xf32>
    %c0_28 = arith.constant 0 : index
    %c12 = arith.constant 12 : index
    %28 = vector.load %arg13[%c0_28, %c12] : memref<4x144xf32, #tpu.memory_space<vmem>>, vector<4x118xf32>
    %cst_29 = arith.constant dense<0.000000e+00> : vector<8x118xf32>
    %29 = tpu.matmul %27, %28, %cst_29 {dimension_numbers = #tpu.dot_dimension_numbers<[1], [0], [0], [1], [0, 0, 1, 1], [], []>} : vector<8x4xf32>, vector<4x118xf32>, vector<8x118xf32> -> vector<8x118xf32>
    %30 = arith.addf %25, %29 : vector<8x118xf32>
    %c4 = arith.constant 4 : index
    %c0_30 = arith.constant 0 : index
    %c0_31 = arith.constant 0 : index
    %31 = vector.load %arg5[%c4, %c0_30, %c0_31] : memref<9x8x4xf32, #tpu.memory_space<vmem>>, vector<1x8x4xf32>
    %32 = vector.shape_cast %31 : vector<1x8x4xf32> to vector<8x4xf32>
    %c0_32 = arith.constant 0 : index
    %c13 = arith.constant 13 : index
    %33 = vector.load %arg13[%c0_32, %c13] : memref<4x144xf32, #tpu.memory_space<vmem>>, vector<4x118xf32>
    %cst_33 = arith.constant dense<0.000000e+00> : vector<8x118xf32>
    %34 = tpu.matmul %32, %33, %cst_33 {dimension_numbers = #tpu.dot_dimension_numbers<[1], [0], [0], [1], [0, 0, 1, 1], [], []>} : vector<8x4xf32>, vector<4x118xf32>, vector<8x118xf32> -> vector<8x118xf32>
    %35 = arith.addf %30, %34 : vector<8x118xf32>
    %c5 = arith.constant 5 : index
    %c0_34 = arith.constant 0 : index
    %c0_35 = arith.constant 0 : index
    %36 = vector.load %arg5[%c5, %c0_34, %c0_35] : memref<9x8x4xf32, #tpu.memory_space<vmem>>, vector<1x8x4xf32>
    %37 = vector.shape_cast %36 : vector<1x8x4xf32> to vector<8x4xf32>
    %c0_36 = arith.constant 0 : index
    %c14 = arith.constant 14 : index
    %38 = vector.load %arg13[%c0_36, %c14] : memref<4x144xf32, #tpu.memory_space<vmem>>, vector<4x118xf32>
    %cst_37 = arith.constant dense<0.000000e+00> : vector<8x118xf32>
    %39 = tpu.matmul %37, %38, %cst_37 {dimension_numbers = #tpu.dot_dimension_numbers<[1], [0], [0], [1], [0, 0, 1, 1], [], []>} : vector<8x4xf32>, vector<4x118xf32>, vector<8x118xf32> -> vector<8x118xf32>
    %40 = arith.addf %35, %39 : vector<8x118xf32>
    %c6 = arith.constant 6 : index
    %c0_38 = arith.constant 0 : index
    %c0_39 = arith.constant 0 : index
    %41 = vector.load %arg5[%c6, %c0_38, %c0_39] : memref<9x8x4xf32, #tpu.memory_space<vmem>>, vector<1x8x4xf32>
    %42 = vector.shape_cast %41 : vector<1x8x4xf32> to vector<8x4xf32>
    %c0_40 = arith.constant 0 : index
    %c24 = arith.constant 24 : index
    %43 = vector.load %arg13[%c0_40, %c24] : memref<4x144xf32, #tpu.memory_space<vmem>>, vector<4x118xf32>
    %cst_41 = arith.constant dense<0.000000e+00> : vector<8x118xf32>
    %44 = tpu.matmul %42, %43, %cst_41 {dimension_numbers = #tpu.dot_dimension_numbers<[1], [0], [0], [1], [0, 0, 1, 1], [], []>} : vector<8x4xf32>, vector<4x118xf32>, vector<8x118xf32> -> vector<8x118xf32>
    %45 = arith.addf %40, %44 : vector<8x118xf32>
    %c7 = arith.constant 7 : index
    %c0_42 = arith.constant 0 : index
    %c0_43 = arith.constant 0 : index
    %46 = vector.load %arg5[%c7, %c0_42, %c0_43] : memref<9x8x4xf32, #tpu.memory_space<vmem>>, vector<1x8x4xf32>
    %47 = vector.shape_cast %46 : vector<1x8x4xf32> to vector<8x4xf32>
    %c0_44 = arith.constant 0 : index
    %c25 = arith.constant 25 : index
    %48 = vector.load %arg13[%c0_44, %c25] : memref<4x144xf32, #tpu.memory_space<vmem>>, vector<4x118xf32>
    %cst_45 = arith.constant dense<0.000000e+00> : vector<8x118xf32>
    %49 = tpu.matmul %47, %48, %cst_45 {dimension_numbers = #tpu.dot_dimension_numbers<[1], [0], [0], [1], [0, 0, 1, 1], [], []>} : vector<8x4xf32>, vector<4x118xf32>, vector<8x118xf32> -> vector<8x118xf32>
    %50 = arith.addf %45, %49 : vector<8x118xf32>
    %c8 = arith.constant 8 : index
    %c0_46 = arith.constant 0 : index
    %c0_47 = arith.constant 0 : index
    %51 = vector.load %arg5[%c8, %c0_46, %c0_47] : memref<9x8x4xf32, #tpu.memory_space<vmem>>, vector<1x8x4xf32>
    %52 = vector.shape_cast %51 : vector<1x8x4xf32> to vector<8x4xf32>
    %c0_48 = arith.constant 0 : index
    %c26 = arith.constant 26 : index
    %53 = vector.load %arg13[%c0_48, %c26] : memref<4x144xf32, #tpu.memory_space<vmem>>, vector<4x118xf32>
    %cst_49 = arith.constant dense<0.000000e+00> : vector<8x118xf32>
    %54 = tpu.matmul %52, %53, %cst_49 {dimension_numbers = #tpu.dot_dimension_numbers<[1], [0], [0], [1], [0, 0, 1, 1], [], []>} : vector<8x4xf32>, vector<4x118xf32>, vector<8x118xf32> -> vector<8x118xf32>
    %55 = arith.addf %50, %54 : vector<8x118xf32>
    %c0_50 = arith.constant 0 : index
    %c0_51 = arith.constant 0 : index
    %56 = vector.load %arg6[%c0_50, %c0_51] : memref<8x1xf32, #tpu.memory_space<vmem>>, vector<8x1xf32>
    %57 = vector.broadcast %56 : vector<8x1xf32> to vector<8x118xf32>
    %58 = arith.addf %55, %57 : vector<8x118xf32>
    %cst_52 = arith.constant 0.000000e+00 : f32
    %59 = vector.broadcast %cst_52 : f32 to vector<8x118xf32>
    %60 = arith.maximumf %58, %59 : vector<8x118xf32>
    %cst_53 = arith.constant 1.05070102 : f32
    %61 = vector.broadcast %cst_53 : f32 to vector<8x118xf32>
    %62 = arith.mulf %61, %60 : vector<8x118xf32>
    %c0_54 = arith.constant 0 : index
    %c0_55 = arith.constant 0 : index
    %63 = vector.load %arg7[%c0_54, %c0_55] : memref<4x8xf32, #tpu.memory_space<vmem>>, vector<4x8xf32>
    %cst_56 = arith.constant dense<0.000000e+00> : vector<4x118xf32>
    %64 = tpu.matmul %63, %62, %cst_56 {dimension_numbers = #tpu.dot_dimension_numbers<[1], [0], [0], [1], [0, 0, 1, 1], [], []>} : vector<4x8xf32>, vector<8x118xf32>, vector<4x118xf32> -> vector<4x118xf32>
    %c0_57 = arith.constant 0 : index
    %c0_58 = arith.constant 0 : index
    %65 = vector.load %arg8[%c0_57, %c0_58] : memref<4x1xf32, #tpu.memory_space<vmem>>, vector<4x1xf32>
    %66 = vector.broadcast %65 : vector<4x1xf32> to vector<4x118xf32>
    %67 = arith.addf %64, %66 : vector<4x118xf32>
    %cst_59 = arith.constant 0.000000e+00 : f32
    %68 = vector.broadcast %cst_59 : f32 to vector<4x118xf32>
    %69 = arith.maximumf %67, %68 : vector<4x118xf32>
    %c0_60 = arith.constant 0 : index
    %c0_61 = arith.constant 0 : index
    %70 = vector.load %arg14[%c0_60, %c0_61] : memref<4x118xf32, #tpu.memory_space<vmem>>, vector<4x118xf32>
    tpu.vector_store %arg14[%c0_60, %c0_61], %69 {strides = array<i32>} : memref<4x118xf32, #tpu.memory_space<vmem>>, vector<4x118xf32>,
    %cst_62 = arith.constant 0.000000e+00 : f32
    %71 = vector.broadcast %cst_62 : f32 to vector<8x92xf32>
    %c0_63 = arith.constant 0 : index
    %c0_64 = arith.constant 0 : index
    %c0_65 = arith.constant 0 : index
    %72 = vector.load %arg9[%c0_63, %c0_64, %c0_65] : memref<9x8x4xf32, #tpu.memory_space<vmem>>, vector<1x8x4xf32>
    %73 = vector.shape_cast %72 : vector<1x8x4xf32> to vector<8x4xf32>
    %c0_66 = arith.constant 0 : index
    %c0_67 = arith.constant 0 : index
    %74 = vector.load %arg14[%c0_66, %c0_67] : memref<4x118xf32, #tpu.memory_space<vmem>>, vector<4x92xf32>
    %cst_68 = arith.constant dense<0.000000e+00> : vector<8x92xf32>
    %75 = tpu.matmul %73, %74, %cst_68 {dimension_numbers = #tpu.dot_dimension_numbers<[1], [0], [0], [1], [0, 0, 1, 1], [], []>} : vector<8x4xf32>, vector<4x92xf32>, vector<8x92xf32> -> vector<8x92xf32>
    %76 = arith.addf %71, %75 : vector<8x92xf32>
    %c1_69 = arith.constant 1 : index
    %c0_70 = arith.constant 0 : index
    %c0_71 = arith.constant 0 : index
    %77 = vector.load %arg9[%c1_69, %c0_70, %c0_71] : memref<9x8x4xf32, #tpu.memory_space<vmem>>, vector<1x8x4xf32>
    %78 = vector.shape_cast %77 : vector<1x8x4xf32> to vector<8x4xf32>
    %c0_72 = arith.constant 0 : index
    %c1_73 = arith.constant 1 : index
    %79 = vector.load %arg14[%c0_72, %c1_73] : memref<4x118xf32, #tpu.memory_space<vmem>>, vector<4x92xf32>
    %cst_74 = arith.constant dense<0.000000e+00> : vector<8x92xf32>
    %80 = tpu.matmul %78, %79, %cst_74 {dimension_numbers = #tpu.dot_dimension_numbers<[1], [0], [0], [1], [0, 0, 1, 1], [], []>} : vector<8x4xf32>, vector<4x92xf32>, vector<8x92xf32> -> vector<8x92xf32>
    %81 = arith.addf %76, %80 : vector<8x92xf32>
    %c2_75 = arith.constant 2 : index
    %c0_76 = arith.constant 0 : index
    %c0_77 = arith.constant 0 : index
    %82 = vector.load %arg9[%c2_75, %c0_76, %c0_77] : memref<9x8x4xf32, #tpu.memory_space<vmem>>, vector<1x8x4xf32>
    %83 = vector.shape_cast %82 : vector<1x8x4xf32> to vector<8x4xf32>
    %c0_78 = arith.constant 0 : index
    %c2_79 = arith.constant 2 : index
    %84 = vector.load %arg14[%c0_78, %c2_79] : memref<4x118xf32, #tpu.memory_space<vmem>>, vector<4x92xf32>
    %cst_80 = arith.constant dense<0.000000e+00> : vector<8x92xf32>
    %85 = tpu.matmul %83, %84, %cst_80 {dimension_numbers = #tpu.dot_dimension_numbers<[1], [0], [0], [1], [0, 0, 1, 1], [], []>} : vector<8x4xf32>, vector<4x92xf32>, vector<8x92xf32> -> vector<8x92xf32>
    %86 = arith.addf %81, %85 : vector<8x92xf32>
    %c3_81 = arith.constant 3 : index
    %c0_82 = arith.constant 0 : index
    %c0_83 = arith.constant 0 : index
    %87 = vector.load %arg9[%c3_81, %c0_82, %c0_83] : memref<9x8x4xf32, #tpu.memory_space<vmem>>, vector<1x8x4xf32>
    %88 = vector.shape_cast %87 : vector<1x8x4xf32> to vector<8x4xf32>
    %c0_84 = arith.constant 0 : index
    %c12_85 = arith.constant 12 : index
    %89 = vector.load %arg14[%c0_84, %c12_85] : memref<4x118xf32, #tpu.memory_space<vmem>>, vector<4x92xf32>
    %cst_86 = arith.constant dense<0.000000e+00> : vector<8x92xf32>
    %90 = tpu.matmul %88, %89, %cst_86 {dimension_numbers = #tpu.dot_dimension_numbers<[1], [0], [0], [1], [0, 0, 1, 1], [], []>} : vector<8x4xf32>, vector<4x92xf32>, vector<8x92xf32> -> vector<8x92xf32>
    %91 = arith.addf %86, %90 : vector<8x92xf32>
    %c4_87 = arith.constant 4 : index
    %c0_88 = arith.constant 0 : index
    %c0_89 = arith.constant 0 : index
    %92 = vector.load %arg9[%c4_87, %c0_88, %c0_89] : memref<9x8x4xf32, #tpu.memory_space<vmem>>, vector<1x8x4xf32>
    %93 = vector.shape_cast %92 : vector<1x8x4xf32> to vector<8x4xf32>
    %c0_90 = arith.constant 0 : index
    %c13_91 = arith.constant 13 : index
    %94 = vector.load %arg14[%c0_90, %c13_91] : memref<4x118xf32, #tpu.memory_space<vmem>>, vector<4x92xf32>
    %cst_92 = arith.constant dense<0.000000e+00> : vector<8x92xf32>
    %95 = tpu.matmul %93, %94, %cst_92 {dimension_numbers = #tpu.dot_dimension_numbers<[1], [0], [0], [1], [0, 0, 1, 1], [], []>} : vector<8x4xf32>, vector<4x92xf32>, vector<8x92xf32> -> vector<8x92xf32>
    %96 = arith.addf %91, %95 : vector<8x92xf32>
    %c5_93 = arith.constant 5 : index
    %c0_94 = arith.constant 0 : index
    %c0_95 = arith.constant 0 : index
    %97 = vector.load %arg9[%c5_93, %c0_94, %c0_95] : memref<9x8x4xf32, #tpu.memory_space<vmem>>, vector<1x8x4xf32>
    %98 = vector.shape_cast %97 : vector<1x8x4xf32> to vector<8x4xf32>
    %c0_96 = arith.constant 0 : index
    %c14_97 = arith.constant 14 : index
    %99 = vector.load %arg14[%c0_96, %c14_97] : memref<4x118xf32, #tpu.memory_space<vmem>>, vector<4x92xf32>
    %cst_98 = arith.constant dense<0.000000e+00> : vector<8x92xf32>
    %100 = tpu.matmul %98, %99, %cst_98 {dimension_numbers = #tpu.dot_dimension_numbers<[1], [0], [0], [1], [0, 0, 1, 1], [], []>} : vector<8x4xf32>, vector<4x92xf32>, vector<8x92xf32> -> vector<8x92xf32>
    %101 = arith.addf %96, %100 : vector<8x92xf32>
    %c6_99 = arith.constant 6 : index
    %c0_100 = arith.constant 0 : index
    %c0_101 = arith.constant 0 : index
    %102 = vector.load %arg9[%c6_99, %c0_100, %c0_101] : memref<9x8x4xf32, #tpu.memory_space<vmem>>, vector<1x8x4xf32>
    %103 = vector.shape_cast %102 : vector<1x8x4xf32> to vector<8x4xf32>
    %c0_102 = arith.constant 0 : index
    %c24_103 = arith.constant 24 : index
    %104 = vector.load %arg14[%c0_102, %c24_103] : memref<4x118xf32, #tpu.memory_space<vmem>>, vector<4x92xf32>
    %cst_104 = arith.constant dense<0.000000e+00> : vector<8x92xf32>
    %105 = tpu.matmul %103, %104, %cst_104 {dimension_numbers = #tpu.dot_dimension_numbers<[1], [0], [0], [1], [0, 0, 1, 1], [], []>} : vector<8x4xf32>, vector<4x92xf32>, vector<8x92xf32> -> vector<8x92xf32>
    %106 = arith.addf %101, %105 : vector<8x92xf32>
    %c7_105 = arith.constant 7 : index
    %c0_106 = arith.constant 0 : index
    %c0_107 = arith.constant 0 : index
    %107 = vector.load %arg9[%c7_105, %c0_106, %c0_107] : memref<9x8x4xf32, #tpu.memory_space<vmem>>, vector<1x8x4xf32>
    %108 = vector.shape_cast %107 : vector<1x8x4xf32> to vector<8x4xf32>
    %c0_108 = arith.constant 0 : index
    %c25_109 = arith.constant 25 : index
    %109 = vector.load %arg14[%c0_108, %c25_109] : memref<4x118xf32, #tpu.memory_space<vmem>>, vector<4x92xf32>
    %cst_110 = arith.constant dense<0.000000e+00> : vector<8x92xf32>
    %110 = tpu.matmul %108, %109, %cst_110 {dimension_numbers = #tpu.dot_dimension_numbers<[1], [0], [0], [1], [0, 0, 1, 1], [], []>} : vector<8x4xf32>, vector<4x92xf32>, vector<8x92xf32> -> vector<8x92xf32>
    %111 = arith.addf %106, %110 : vector<8x92xf32>
    %c8_111 = arith.constant 8 : index
    %c0_112 = arith.constant 0 : index
    %c0_113 = arith.constant 0 : index
    %112 = vector.load %arg9[%c8_111, %c0_112, %c0_113] : memref<9x8x4xf32, #tpu.memory_space<vmem>>, vector<1x8x4xf32>
    %113 = vector.shape_cast %112 : vector<1x8x4xf32> to vector<8x4xf32>
    %c0_114 = arith.constant 0 : index
    %c26_115 = arith.constant 26 : index
    %114 = vector.load %arg14[%c0_114, %c26_115] : memref<4x118xf32, #tpu.memory_space<vmem>>, vector<4x92xf32>
    %cst_116 = arith.constant dense<0.000000e+00> : vector<8x92xf32>
    %115 = tpu.matmul %113, %114, %cst_116 {dimension_numbers = #tpu.dot_dimension_numbers<[1], [0], [0], [1], [0, 0, 1, 1], [], []>} : vector<8x4xf32>, vector<4x92xf32>, vector<8x92xf32> -> vector<8x92xf32>
    %116 = arith.addf %111, %115 : vector<8x92xf32>
    %c0_117 = arith.constant 0 : index
    %c0_118 = arith.constant 0 : index
    %117 = vector.load %arg10[%c0_117, %c0_118] : memref<8x1xf32, #tpu.memory_space<vmem>>, vector<8x1xf32>
    %118 = vector.broadcast %117 : vector<8x1xf32> to vector<8x92xf32>
    %119 = arith.addf %116, %118 : vector<8x92xf32>
    %cst_119 = arith.constant 0.000000e+00 : f32
    %120 = vector.broadcast %cst_119 : f32 to vector<8x92xf32>
    %121 = arith.maximumf %119, %120 : vector<8x92xf32>
    %c0_120 = arith.constant 0 : index
    %c0_121 = arith.constant 0 : index
    %122 = vector.load %arg2[%c0_120, %c0_121] : memref<1x92xf32, #tpu.memory_space<vmem>>, vector<1x92xf32>
    %123 = vector.broadcast %122 : vector<1x92xf32> to vector<8x92xf32>
    %124 = arith.mulf %121, %123 : vector<8x92xf32>
    %cst_122 = arith.constant dense<0.000000e+00> : vector<8xf32>
    %125 = vector.multi_reduction <add>, %124, %cst_122 [1] : vector<8x92xf32> to vector<8xf32>
    %126 = vector.shape_cast %125 : vector<8xf32> to vector<8x1xf32>
    %cst_123 = arith.constant 1.562500e-02 : f32
    %127 = vector.broadcast %cst_123 : f32 to vector<8x1xf32>
    %128 = arith.mulf %126, %127 : vector<8x1xf32>
    %129 = vector.extract_strided_slice %128 {offsets = [0, 0], sizes = [4, 1], strides = [1, 1]} : vector<8x1xf32> to vector<4x1xf32>
    %cst_124 = arith.constant 0.000000e+00 : f32
    %130 = vector.broadcast %cst_124 : f32 to vector<4x1xf32>
    %131 = arith.subf %130, %129 : vector<4x1xf32>
    %132 = math.exp %131 : vector<4x1xf32>
    %cst_125 = arith.constant 1.000000e+00 : f32
    %133 = vector.broadcast %cst_125 : f32 to vector<4x1xf32>
    %134 = arith.addf %133, %132 : vector<4x1xf32>
    %cst_126 = arith.constant 3.000000e+00 : f32
    %135 = vector.broadcast %cst_126 : f32 to vector<4x1xf32>
    %136 = arith.divf %135, %134 : vector<4x1xf32>
    %c0_127 = arith.constant 0 : index
    %c0_128 = arith.constant 0 : index
    %c0_129 = arith.constant 0 : index
    %137 = vector.load %arg11[%c0_127, %c0_128, %c0_129] : memref<1x4x1xf32, #tpu.memory_space<vmem>>, vector<1x4x1xf32>
    %138 = vector.shape_cast %137 : vector<1x4x1xf32> to vector<4x1xf32>
    %139 = vector.shape_cast %136 : vector<4x1xf32> to vector<1x4x1xf32>
    tpu.vector_store %arg11[%c0_127, %c0_128, %c0_129], %139 {strides = array<i32>} : memref<1x4x1xf32, #tpu.memory_space<vmem>>, vector<1x4x1xf32>,
    %140 = vector.extract_strided_slice %128 {offsets = [4, 0], sizes = [4, 1], strides = [1, 1]} : vector<8x1xf32> to vector<4x1xf32>
    %c0_130 = arith.constant 0 : index
    %c0_131 = arith.constant 0 : index
    %c0_132 = arith.constant 0 : index
    %141 = vector.load %arg12[%c0_130, %c0_131, %c0_132] : memref<1x4x1xf32, #tpu.memory_space<vmem>>, vector<1x4x1xf32>
    %142 = vector.shape_cast %141 : vector<1x4x1xf32> to vector<4x1xf32>
    %143 = vector.shape_cast %140 : vector<4x1xf32> to vector<1x4x1xf32>
    tpu.vector_store %arg12[%c0_130, %c0_131, %c0_132], %143 {strides = array<i32>} : memref<1x4x1xf32, #tpu.memory_space<vmem>>, vector<1x4x1xf32>,
    return
  }
  func.func @transform_0(%arg0: i32) -> (i32, i32, i32) {
    %c0_i32 = arith.constant 0 : i32
    %c0_i32_0 = arith.constant 0 : i32
    %c0_i32_1 = arith.constant 0 : i32
    return %arg0, %c0_i32, %c0_i32_0 : i32, i32, i32
  }
  func.func @transform_1(%arg0: i32) -> (i32, i32) {
    %c0_i32 = arith.constant 0 : i32
    %c0_i32_0 = arith.constant 0 : i32
    %c0_i32_1 = arith.constant 0 : i32
    return %c0_i32, %c0_i32_0 : i32, i32
  }
  func.func @transform_2(%arg0: i32) -> (i32, i32) {
    %c0_i32 = arith.constant 0 : i32
    %c0_i32_0 = arith.constant 0 : i32
    %c0_i32_1 = arith.constant 0 : i32
    return %c0_i32, %c0_i32_0 : i32, i32
  }
  func.func @transform_3(%arg0: i32) -> (i32, i32) {
    %c0_i32 = arith.constant 0 : i32
    %c0_i32_0 = arith.constant 0 : i32
    %c0_i32_1 = arith.constant 0 : i32
    return %c0_i32, %c0_i32_0 : i32, i32
  }
  func.func @transform_4(%arg0: i32) -> (i32, i32, i32) {
    %c0_i32 = arith.constant 0 : i32
    %c0_i32_0 = arith.constant 0 : i32
    %c0_i32_1 = arith.constant 0 : i32
    %c0_i32_2 = arith.constant 0 : i32
    return %c0_i32, %c0_i32_0, %c0_i32_1 : i32, i32, i32
  }
  func.func @transform_5(%arg0: i32) -> (i32, i32) {
    %c0_i32 = arith.constant 0 : i32
    %c0_i32_0 = arith.constant 0 : i32
    %c0_i32_1 = arith.constant 0 : i32
    return %c0_i32, %c0_i32_0 : i32, i32
  }
  func.func @transform_6(%arg0: i32) -> (i32, i32) {
    %c0_i32 = arith.constant 0 : i32
    %c0_i32_0 = arith.constant 0 : i32
    %c0_i32_1 = arith.constant 0 : i32
    return %c0_i32, %c0_i32_0 : i32, i32
  }
  func.func @transform_7(%arg0: i32) -> (i32, i32) {
    %c0_i32 = arith.constant 0 : i32
    %c0_i32_0 = arith.constant 0 : i32
    %c0_i32_1 = arith.constant 0 : i32
    return %c0_i32, %c0_i32_0 : i32, i32
  }
  func.func @transform_8(%arg0: i32) -> (i32, i32, i32) {
    %c0_i32 = arith.constant 0 : i32
    %c0_i32_0 = arith.constant 0 : i32
    %c0_i32_1 = arith.constant 0 : i32
    %c0_i32_2 = arith.constant 0 : i32
    return %c0_i32, %c0_i32_0, %c0_i32_1 : i32, i32, i32
  }
  func.func @transform_9(%arg0: i32) -> (i32, i32) {
    %c0_i32 = arith.constant 0 : i32
    %c0_i32_0 = arith.constant 0 : i32
    %c0_i32_1 = arith.constant 0 : i32
    return %c0_i32, %c0_i32_0 : i32, i32
  }
  func.func @transform_10(%arg0: i32) -> (i32, i32, i32) {
    %c0_i32 = arith.constant 0 : i32
    %c0_i32_0 = arith.constant 0 : i32
    %c0_i32_1 = arith.constant 0 : i32
    return %arg0, %c0_i32, %c0_i32_0 : i32, i32, i32
  }
  func.func @transform_11(%arg0: i32) -> (i32, i32, i32) {
    %c0_i32 = arith.constant 0 : i32
    %c0_i32_0 = arith.constant 0 : i32
    %c0_i32_1 = arith.constant 0 : i32
    return %arg0, %c0_i32, %c0_i32_0 : i32, i32, i32
  }
}

</mosaic_0001>

<bundles_post_ra>
// kernel: adaptive_instance_norm.3
= control target key start
LH: loop header
LB: loop body
LE: loop exit
PB: predicated region body
PF: predicated region fallthrough
CT: control target
= control target key end

     0   :  { %s423_s12 = smov 0   ;;  %s458_s0 = inlined_call_operand.vmem [shape: f32[2,4,256], index: 0, kind: input, shape index: {}]   ;;  %s459_s1 = inlined_call_operand.vmem [shape: f32[2,4,1], index: 1, kind: input, shape index: {}]   ;;  %s460_s2 = inlined_call_operand.vmem [shape: f32[2,4,1], index: 2, kind: input, shape index: {}]   ;;  %s461_s3 = inlined_call_operand.vmem [shape: f32[2,4,256], index: 3, kind: output, shape index: {}]  }
   0x1 LB: > { %s360_s13 = sadd.s32 4294967295, %s398_s12   ;;  %p364_p0 = scmp.ge.s32.totalorder %s398_s12, 1  ;;  %s398_s12 = sphi %s423_s12, %s13_s12  }
   0x2   : > { %p155_p1 = scmp.lt.s32.totalorder %s398_s12, 3 }
   0x4   : > { %p156_p2 = pnand %p364_p0, %p155_p1 }
   0x5   : > { %p187_p3 = scmp.lt.s32.totalorder (!%p156_p2), %s360_s13, 1 }
   0x6   : > { %159 = sbr.rel (%p156_p2) target bundleno = 429 (0x1ad), region = 32 }
   0xb   : > { %s463_s13 = smov (!%p187_p3, %s360_s13), 1  ;;  %vm212_vm0 = vcmask 1043456   ;;  %v400_v6 = vmov 256.0   ;;  %v401_v12 = vmov 839922192   ;;  %v402_v26 = vmov 0  }
   0xc   : > { %s373_s14 = sshll.u32 %s463_s13, 3  ;;  %388 = vrcp.f32 %v400_v6  ;;  %v228_v13 = vunpack.c.l.s4 %v401_v12  ;;  %386 = vset.pattern.permute.xlu1 %v402_v26  ;;  %387 = vset.pattern.permute.xlu0 %v402_v26  ;;  %s367_s18 = sshll.u32 %s463_s13, 2 }
   0xd   : > { %s191_s17 = scalar_lea.vmem %s458_s0, %s373_s14  ;;  %s195_s21 = scalar_lea.vmem %s459_s1, %s367_s18 }
   0xe   : > { %v205_v0 = vld [vmem:[%s191_s17] sm:$0xff]  ;;  %v229_v15 = vunpack.c.0.s8 %v228_v13  ;;  %s199_s24 = scalar_lea.vmem %s460_s2, %s367_s18  ;;  %s204_s27 = scalar_lea.vmem %s461_s3, %s373_s14 }
   0xf   : > { %207 = vst [vmem:[#allocation1] ss:$2 sm:$0xff] %v205_v0  ;;  %v257_v36 = vld [vmem:[%s195_s21] sm:$0xf] }
  0x10   : > { %v269_v39 = vld [vmem:[%s199_s24] sm:$0xf] }
  0x12   : > { %v389_v7 = vpop.eup %388 }
  0x13   : > { %v219_v8 = vmul.f32 256.0, %v389_v7  ;;  %vm223_vm1 = vweird.f32 %v389_v7 }
  0x15   : > { %v220_v9 = vsub.f32 1.0, %v219_v8 }
  0x16   : > { %v208_v1 = vld.sshfl [vmem:[#allocation1] sm:$0xff pattern:$0x75316420]  ;;  %v209_v2 = vld.sshfl [vmem:[#allocation1 + $0x8] sm:$0xff pattern:$0x75316420] }
  0x17   : > { %v213_v3 = vsel %vm212_vm0, %v208_v1, 0.0  ;;  %v214_v4 = vsel %vm212_vm0, %v209_v2, 0.0  ;;  %v221_v10 = vmul.f32 %v389_v7, %v220_v9 }
  0x18   : > { %v215_v5 = vadd.f32 %v214_v4, %v213_v3 }
  0x19   : > { %v222_v11 = vadd.f32 %v389_v7, %v221_v10 }
  0x1a   : > { %216 = vadd.xlane.f32.xlu0 %v215_v5 }
  0x1b   : > { %v224_v14 = vsel %vm223_vm1, %v389_v7, %v222_v11 }
  0x8d   : > { %v217_v16 = vpop.xlane.xlu0 %216 }
  0x8e   : > { %v225_v17 = vmul.f32 %v224_v14, %v217_v16 }
  0x90   : > { %v230_v18 = vperm.slane %v225_v17, %v229_v15 }
  0x92   : > { %v232_v19 = vsub.f32 %v205_v0, %v230_v18 }
  0x94   : > { %v233_v20 = vmul.f32 %v232_v19, %v232_v19 }
  0x96   : > { %235 = vst [vmem:[#allocation1] ss:$2 sm:$0xff] %v233_v20 }
  0x9d   : > { %v236_v21 = vld.sshfl [vmem:[#allocation1] sm:$0xff pattern:$0x75316420]  ;;  %v237_v22 = vld.sshfl [vmem:[#allocation1 + $0x8] sm:$0xff pattern:$0x75316420] }
  0x9e   : > { %v240_v23 = vsel %vm212_vm0, %v236_v21, 0.0  ;;  %v241_v24 = vsel %vm212_vm0, %v237_v22, 0.0 }
  0x9f   : > { %v242_v25 = vadd.f32 %v241_v24, %v240_v23 }
  0xa1   : > { %243 = vadd.xlane.f32.xlu0 %v242_v25 }
 0x114   : > { %v244_v27 = vpop.xlane.xlu0 %243 }
 0x115   : > { %v245_v28 = vmul.f32 %v244_v27, %v224_v14 }
 0x117   : > { %v246_v29 = vadd.f32 1e-05, %v245_v28 }
 0x119   : > { %390 = vrsqrt.f32 %v246_v29  ;;  %vm253_vm3 = vweird.f32 %v246_v29 }
 0x11f   : > { %v391_v30 = vpop.eup %390 }
 0x120   : > { %v248_v31 = vmul.f32 %v391_v30, %v246_v29  ;;  %vm254_vm2 = vweird.f32 %v391_v30 }
 0x121   : > { %vm255_vm4 = vmor %vm253_vm3, %vm254_vm2 }
 0x122   : > { %v249_v32 = vmul.f32 %v391_v30, %v248_v31 }
 0x124   : > { %v250_v33 = vmul.f32 0.5, %v249_v32 }
 0x126   : > { %v251_v34 = vsub.f32 1.5, %v250_v33 }
 0x128   : > { %v252_v35 = vmul.f32 %v391_v30, %v251_v34 }
 0x12a   : > { %v256_v37 = vsel %vm255_vm4, %v391_v30, %v252_v35 }
 0x12b   : > { %v258_v38 = vmul.f32 %v257_v36, %v256_v37 }
 0x12d   : > { %261 = vperm.xlu1 %386, %v258_v38  }
 0x135   : > { %272 = vperm.xlu1 %386, %v269_v39  }
 0x19f   : > { %v262_v40 = vpop.permute.xlu1 %261 }
 0x1a0   : > { %v266_v41 = vperm.slane %v262_v40, %v229_v15 }
 0x1a2   : > { %v268_v43 = vmul.f32 %v266_v41, %v232_v19 }
 0x1a7   : > { %v273_v42 = vpop.permute.xlu1 %272 }
 0x1a8   : > { %v277_v44 = vperm.slane %v273_v42, %v229_v15 }
 0x1aa   : > { %v279_v45 = vadd.f32 %v277_v44, %v268_v43 }
 0x1ac   : > { %280 = vst [vmem:[%s204_s27] sm:$0xff] %v279_v45 }
 0x1ad PF: > { %s13_s12 = sadd.s32 1, %s398_s12  }
 0x1ae   : > { %p10_p4 = scmp.ge.s32.totalorder %s13_s12, 4  }
 0x1b0   :  { %12 = sbr.rel (!%p10_p4) target bundleno = 1 (0x1), region = 68 }

// kernel: adaptive_instance_norm.2
= control target key start
LH: loop header
LB: loop body
LE: loop exit
PB: predicated region body
PF: predicated region fallthrough
CT: control target
= control target key end

     0   :  { %s1399_s17 = smov 0   ;;  %s1562_s0 = inlined_call_operand.vmem [shape: f32[2,4,144], index: 0, kind: input, shape index: {}]   ;;  %s1563_s1 = inlined_call_operand.vmem [shape: f32[1,92], index: 1, kind: input, shape index: {}]   ;;  %s1564_s2 = inlined_call_operand.vmem [shape: f32[4,4], index: 2, kind: input, shape index: {}]   ;;  %s1565_s3 = inlined_call_operand.vmem [shape: f32[4,1], index: 3, kind: input, shape index: {}]   ;;  %s1566_s4 = inlined_call_operand.vmem [shape: f32[9,8,4], index: 4, kind: input, shape index: {}]   ;;  %s1567_s5 = inlined_call_operand.vmem [shape: f32[8,1], index: 5, kind: input, shape index: {}]   ;;  %s1568_s6 = inlined_call_operand.vmem [shape: f32[4,8], index: 6, kind: input, shape index: {}]   ;;  %s1569_s7 = inlined_call_operand.vmem [shape: f32[4,1], index: 7, kind: input, shape index: {}]   ;;  %s1570_s8 = inlined_call_operand.vmem [shape: f32[9,8,4], index: 8, kind: input, shape index: {}]   ;;  %s1571_s9 = inlined_call_operand.vmem [shape: f32[8,1], index: 9, kind: input, shape index: {}]   ;;  %s1572_s10 = inlined_call_operand.vmem [shape: f32[2,4,1], index: 10, kind: output, shape index: {0}]   ;;  %s1573_s11 = inlined_call_operand.vmem [shape: f32[2,4,1], index: 11, kind: output, shape index: {1}]  }
   0x1 LB: > { %s1229_s18 = sadd.s32 4294967295, %s1328_s17   ;;  %p1233_p0 = scmp.ge.s32.totalorder %s1328_s17, 1  ;;  %s1328_s17 = sphi %s1399_s17, %s22_s17  }
   0x2   : > { %p340_p1 = scmp.lt.s32.totalorder %s1328_s17, 3 }
   0x4   : > { %p341_p2 = pnand %p1233_p0, %p340_p1 }
   0x5   : > { %p383_p3 = scmp.lt.s32.totalorder (!%p341_p2), %s1229_s18, 1  ;;  %s1331_s27 = smov (!%p341_p2), 127  }
   0x6   : > { %344 = sbr.rel (%p341_p2) target bundleno = 1056 (0x420), region = 60  ;;  %s1332_s28 = smov (!%p341_p2), 126  }
   0x7   : > { %s1333_s29 = smov (!%p341_p2), 116   ;;  %s1334_s30 = smov (!%p341_p2), 115  }
   0x8   : > { %s1335_s12 = smov (!%p341_p2), 114   ;;  %s1336_s13 = smov (!%p341_p2), 104  }
   0x9   : > { %s1337_s14 = smov (!%p341_p2), 103   ;;  %s1338_s15 = smov (!%p341_p2), 102  }
   0xb   : > { %v1330_v0 = vmov 0   ;;  %v398_v1 = vld [vmem:[%s1565_s3] sm:$0xf]  ;;  %s1575_s18 = smov (!%p383_p3, %s1229_s18), 1  ;;  %vm412_vm0 = vcmask 1043456   ;;  %vm408_vm1 = vcmask 31744  }
   0xc   : > { %1315 = vset.pattern.permute.xlu0 %v1330_v0  ;;  %1316 = vset.pattern.permute.xlu1 %v1330_v0  ;;  %s1297_s21 = sshll.u32 %s1575_s18, 3  ;;  %v397_v3 = vld [vmem:[%s1564_s2] sm:$0xf]  ;;  %vm464_vm2 = vcmask 130052   ;;  %v1242_v35 = vld [vmem:[%s1566_s4 + $0x8] sm:$0xff]  ;;  %vm571_vm4 = vcmask 949248  }
   0xd   : > { %401 = vperm.xlu0 %1315, %v398_v1   ;;  %s387_s24 = scalar_lea.vmem %s1562_s0, %s1297_s21  ;;  %vm465_vm3 = vmor %vm464_vm2, %vm412_vm0  ;;  %v794_v32 = vld [vmem:[%s1567_s5] sm:$0xff]  ;;  %vm649_vm5 = vcmask 932864   ;;  %v1247_v44 = vld [vmem:[%s1566_s4 + $0x10] sm:$0xff]  ;;  %vm610_vm6 = vcmask 941056   ;;  %vm766_vm7 = vcmask 834560   ;;  %vm727_vm8 = vcmask 842752  }
   0xe   : > { %v396_v2 = vld [vmem:[%s387_s24] sm:$0xff]  ;;  %v1256_v45 = vld [vmem:[%s1566_s4 + $0x28] sm:$0xff]  ;;  %v1250_v46 = vld [vmem:[%s1566_s4 + $0x18] sm:$0xff]  ;;  %vm688_vm9 = vcmask 850944   ;;  %vm810_vm10 = vcmask 64512   ;;  %vm835_vm11 = vcmask 961536  }
   0xf   : > { %405 = vst [vmem:[#allocation1] ss:$2 sm:$0xff] %v396_v2  ;;  %v467_v36 = vld [vmem:[%s1566_s4] sm:$0xff]  ;;  %v1262_v57 = vld [vmem:[%s1566_s4 + $0x38] sm:$0xff]  ;;  %v1259_v60 = vld [vmem:[%s1566_s4 + $0x30] sm:$0xff]  ;;  %vm1117_vm12 = vcmask 752640  }
  0x10   : > { %v1253_v48 = vld [vmem:[%s1566_s4 + $0x20] sm:$0xff]  ;;  %vm1143_vm13 = vcmask 7172   ;;  %vm1141_vm2 = vcmask 3072  }
  0x11   : > { %v1265_v53 = vld [vmem:[%s1566_s4 + $0x40] sm:$0xff] }
  0x12   : > { %v804_v0 = vld [vmem:[%s1569_s7] sm:$0xf] }
  0x16   : > { %v406_v4 = vld.sshfl [vmem:[#allocation1] sm:$0xff pattern:$0x75316420]  ;;  %v407_v5 = vld.sshfl [vmem:[#allocation1 + $0x8] sm:$0xff pattern:$0x75316420] }
  0x17   : > { %1238 = vmatpush.msk.msra.mxu0 %vm412_vm0, %v406_v4  ;;  %1240 = vmatpush.msk.msra.mxu1 %vm412_vm0, %v407_v5 }
  0x18   : > { %1239 = vmatmul.msk.f32.vlgmr.msra.gmra.mxu0 %vm408_vm1, %v397_v3  ;;  %1241 = vmatmul.msk.f32.vlgmr.msra.gmra.mxu1 %vm408_vm1, %v397_v3 }
  0x7f   : > { %v402_v6 = vpop.permute.xlu0 %401 }
  0x95   : > { %v434_v7 = vpop.f32.mrf.mxu0  ;;  %v454_v8 = vpop.f32.mrf.mxu1 }
  0x96   : > { %v435_v9 = vadd.f32 %v434_v7, %v402_v6  ;;  %v455_v10 = vadd.f32 %v454_v8, %v402_v6 }
  0x98   : > { %v458_v11 = vmax.f32 %v455_v10, 0.0  ;;  %v457_v12 = vmax.f32 %v435_v9, 0.0 }
  0x9a   : > { %v461_v13 = vrot.slane %v458_v11, 4 }
  0x9c   : > { %v462_v14 = vsel %vm412_vm0, %v457_v12, %v461_v13 }
  0x9d   : > { %466 = vst.msk [vmem:[#allocation2] sm:$0xff] %vm465_vm3, %v462_v14 }
  0xa4   : > { %v468_v15 = vld [vmem:[#allocation2] sm:$0xf] }
  0xa5   : > { %472 = vst [vmem:[#allocation1] ss:$2 sm:$0xff] %v468_v15  ;;  %1245 = vmatpush.msk.msra.mxu3 %vm412_vm0, %v468_v15  ;;  %v528_v17 = vld [vmem:[#allocation2] sm:$0xf] }
  0xa6   : > { %v601_v18 = vld [vmem:[#allocation2] sm:$0xff]  ;;  %1246 = vmatmul.msk.f32.vlgmr.msra.gmra.mxu3 %vm408_vm1, %v467_v36 }
  0xac   : > { %v473_v16 = vld.sshfl [vmem:[#allocation1] sm:$0xff pattern:$0x75316420] }
  0xad   : > { %530 = vst [vmem:[#allocation1] ss:$2 sm:$0xff] %v528_v17  ;;  %474 = vrot.lane.b32.xlu0 %v473_v16, %s1331_s27 }
  0xb4   : > { %v531_v19 = vld.sshfl [vmem:[#allocation1] sm:$0xff pattern:$0x75316420] }
  0xb5   : > { %532 = vrot.lane.b32.xlu0 %v531_v19, %s1332_s28  ;;  %564 = vst [vmem:[#allocation1] ss:$2 sm:$0xff] %v601_v18 }
  0xbc   : > { %v566_v20 = vld.sshfl [vmem:[#allocation1 + $0x8] sm:$0xff pattern:$0x75316420]  ;;  %v565_v21 = vld.sshfl [vmem:[#allocation1] sm:$0xff pattern:$0x75316420] }
  0xbd   : > { %569 = vrot.lane.b32.xlu2 %v566_v20, %s1333_s29  ;;  %567 = vrot.lane.b32.xlu1 %v565_v21, %s1333_s29  ;;  %603 = vst [vmem:[#allocation1] ss:$2 sm:$0xff] %v601_v18  ;;  %v803_v20 = vld [vmem:[%s1568_s6] sm:$0xf] }
  0xc4   : > { %v604_v22 = vld.sshfl [vmem:[#allocation1] sm:$0xff pattern:$0x75316420]  ;;  %v605_v23 = vld.sshfl [vmem:[#allocation1 + $0x8] sm:$0xff pattern:$0x75316420] }
  0xc5   : > { %606 = vrot.lane.b32.xlu1 %v604_v22, %s1334_s30  ;;  %642 = vst [vmem:[#allocation1] ss:$2 sm:$0xff] %v601_v18 }
  0xcc   : > { %v643_v24 = vld.sshfl [vmem:[#allocation1] sm:$0xff pattern:$0x75316420]  ;;  %v644_v25 = vld.sshfl [vmem:[#allocation1 + $0x8] sm:$0xff pattern:$0x75316420] }
  0xcd   : > { %608 = vrot.lane.b32.xlu1 %v605_v23, %s1334_s30  ;;  %645 = vrot.lane.b32.xlu2 %v643_v24, %s1335_s12  ;;  %681 = vst [vmem:[#allocation1] ss:$2 sm:$0xff] %v601_v18 }
  0xd4   : > { %v683_v26 = vld.sshfl [vmem:[#allocation1 + $0x8] sm:$0xff pattern:$0x75316420]  ;;  %v682_v27 = vld.sshfl [vmem:[#allocation1] sm:$0xff pattern:$0x75316420] }
  0xd5   : > { %647 = vrot.lane.b32.xlu2 %v644_v25, %s1335_s12  ;;  %720 = vst [vmem:[#allocation1] ss:$2 sm:$0xff] %v601_v18 }
  0xdc   : > { %v721_v28 = vld.sshfl [vmem:[#allocation1] sm:$0xff pattern:$0x75316420]  ;;  %v722_v29 = vld.sshfl [vmem:[#allocation1 + $0x8] sm:$0xff pattern:$0x75316420] }
  0xdd   : > { %684 = vrot.lane.b32.xlu2 %v682_v27, %s1336_s13  ;;  %759 = vst [vmem:[#allocation1] ss:$2 sm:$0xff] %v601_v18  ;;  %v837_v27 = vld [vmem:[%s1570_s8] sm:$0xff] }
  0xe4   : > { %v761_v30 = vld.sshfl [vmem:[#allocation1 + $0x8] sm:$0xff pattern:$0x75316420]  ;;  %v760_v31 = vld.sshfl [vmem:[#allocation1] sm:$0xff pattern:$0x75316420] }
  0xe5   : > { %725 = vrot.lane.b32.xlu2 %v722_v29, %s1337_s14  ;;  %764 = vrot.lane.b32.xlu1 %v761_v30, %s1338_s15  ;;  %v1286_v30 = vld [vmem:[%s1570_s8 + $0x30] sm:$0xff] }
  0xe6   : > { %762 = vrot.lane.b32.xlu0 %v760_v31, %s1338_s15 }
  0xed   : > { %723 = vrot.lane.b32.xlu1 %v721_v28, %s1337_s14  ;;  %v1274_v28 = vld [vmem:[%s1570_s8 + $0x10] sm:$0xff] }
  0xee   : > { %686 = vrot.lane.b32.xlu0 %v683_v26, %s1336_s13  ;;  %v1104_v26 = vld [vmem:[%s1571_s9] sm:$0xff] }
  0xf5   : > { %807 = vperm.xlu1 %1316, %v804_v0  }
  0xf6   : > { %797 = vperm.xlu0 %1315, %v794_v32   ;;  %v1283_v32 = vld [vmem:[%s1570_s8 + $0x28] sm:$0xff] }
 0x117   : > { %v570_v33 = vpop.permute.xlu2 %569 }
 0x11f   : > { %v475_v34 = vpop.permute.xlu0 %474 }
 0x120   : > { %1243 = vmatpush.msk.msra.mxu2 %vm412_vm0, %v475_v34  ;;  %v1269_v34 = vld [vmem:[%s1570_s8 + $0x8] sm:$0xff] }
 0x121   : > { %1244 = vmatmul.msk.f32.vlgmr.msra.gmra.mxu2 %vm408_vm1, %v1242_v35  ;;  %v1277_v35 = vld [vmem:[%s1570_s8 + $0x18] sm:$0xff] }
 0x127   : > { %v533_v37 = vpop.permute.xlu0 %532  ;;  %v646_v38 = vpop.permute.xlu2 %645 }
 0x128   : > { %1248 = vmatpush.msk.msrb.mxu0 %vm412_vm0, %v533_v37 }
 0x129   : > { %1249 = vmatmul.msk.f32.vlgmr.msrb.gmra.mxu0 %vm408_vm1, %v1247_v44  ;;  %v523_v62 = vpop.f32.mrf.mxu3 }
 0x12f   : > { %v568_v39 = vpop.permute.xlu1 %567  ;;  %v648_v40 = vpop.permute.xlu2 %647 }
 0x130   : > { %v572_v41 = vsel %vm571_vm4, %v568_v39, %v570_v33  ;;  %v650_v42 = vsel %vm649_vm5, %v646_v38, %v648_v40  ;;  %v1280_v38 = vld [vmem:[%s1570_s8 + $0x20] sm:$0xff]  ;;  %v1289_v39 = vld [vmem:[%s1570_s8 + $0x38] sm:$0xff] }
 0x131   : > { %1251 = vmatpush.msk.msrb.mxu1 %vm412_vm0, %v572_v41  ;;  %1257 = vmatpush.msk.msrb.mxu3 %vm412_vm0, %v650_v42  ;;  %v1292_v42 = vld [vmem:[%s1570_s8 + $0x40] sm:$0xff] }
 0x132   : > { %1258 = vmatmul.msk.f32.vlgmr.msrb.gmra.mxu3 %vm408_vm1, %v1256_v45  ;;  %1252 = vmatmul.msk.f32.vlgmr.msrb.gmra.mxu1 %vm408_vm1, %v1250_v46 }
 0x137   : > { %v607_v43 = vpop.permute.xlu1 %606  ;;  %v685_v50 = vpop.permute.xlu2 %684 }
 0x13f   : > { %v609_v47 = vpop.permute.xlu1 %608  ;;  %v726_v55 = vpop.permute.xlu2 %725 }
 0x140   : > { %v611_v49 = vsel %vm610_vm6, %v607_v43, %v609_v47 }
 0x141   : > { %1254 = vmatpush.msk.msrb.mxu2 %vm412_vm0, %v611_v49 }
 0x142   : > { %1255 = vmatmul.msk.f32.vlgmr.msrb.gmra.mxu2 %vm408_vm1, %v1253_v48 }
 0x157   : > { %v765_v51 = vpop.permute.xlu1 %764 }
 0x158   : > { %v763_v52 = vpop.permute.xlu0 %762 }
 0x159   : > { %v767_v54 = vsel %vm766_vm7, %v763_v52, %v765_v51 }
 0x15a   : > { %1266 = vmatpush.msk.msra.mxu2 %vm412_vm0, %v767_v54 }
 0x15b   : > { %1267 = vmatmul.msk.f32.vlgmr.msra.gmra.mxu2 %vm408_vm1, %v1265_v53 }
 0x15f   : > { %v724_v56 = vpop.permute.xlu1 %723 }
 0x160   : > { %v728_v58 = vsel %vm727_vm8, %v724_v56, %v726_v55  ;;  %v687_v59 = vpop.permute.xlu0 %686 }
 0x161   : > { %v689_v61 = vsel %vm688_vm9, %v685_v50, %v687_v59  ;;  %1263 = vmatpush.msk.msra.mxu1 %vm412_vm0, %v728_v58 }
 0x162   : > { %1260 = vmatpush.msk.msra.mxu0 %vm412_vm0, %v689_v61  ;;  %1264 = vmatmul.msk.f32.vlgmr.msra.gmra.mxu1 %vm408_vm1, %v1262_v57 }
 0x163   : > { %1261 = vmatmul.msk.f32.vlgmr.msra.gmra.mxu0 %vm408_vm1, %v1259_v60 }
 0x167   : > { %v808_v21 = vpop.permute.xlu1 %807 }
 0x168   : > { %v798_v16 = vpop.permute.xlu0 %797 }
 0x1a4   : > { %v498_v63 = vpop.f32.mrf.mxu2 }
 0x1a5   : > { %v524_v1 = vadd.f32 %v523_v62, %v498_v63  ;;  %v1317_v63 = vld [vmem:[%s1563_s1] ss:$0 sm:$0xff] }
 0x1a6   : > { %v556_v2 = vpop.f32.mrf.mxu0 }
 0x1a7   : > { %v559_v3 = vadd.f32 %v556_v2, %v524_v1 }
 0x1af   : > { %v595_v4 = vpop.f32.mrf.mxu1 }
 0x1b0   : > { %v598_v5 = vadd.f32 %v595_v4, %v559_v3 }
 0x1b5   : > { %v673_v8 = vpop.f32.mrf.mxu3 }
 0x1c5   : > { %v634_v6 = vpop.f32.mrf.mxu2 }
 0x1c6   : > { %v637_v7 = vadd.f32 %v634_v6, %v598_v5 }
 0x1c8   : > { %v676_v9 = vadd.f32 %v673_v8, %v637_v7 }
 0x1de   : > { %v790_v13 = vpop.f32.mrf.mxu2 }
 0x1df   : > { %v751_v11 = vpop.f32.mrf.mxu1 }
 0x1e0   : > { %v712_v10 = vpop.f32.mrf.mxu0 }
 0x1e1   : > { %v715_v12 = vadd.f32 %v712_v10, %v676_v9 }
 0x1e3   : > { %v754_v14 = vadd.f32 %v751_v11, %v715_v12 }
 0x1e5   : > { %v793_v15 = vadd.f32 %v790_v13, %v754_v14 }
 0x1e7   : > { %v800_v17 = vadd.f32 %v798_v16, %v793_v15 }
 0x1e9   : > { %v801_v18 = vmax.f32 %v800_v17, 0.0 }
 0x1eb   : > { %v802_v19 = vmul.f32 1.050701, %v801_v18 }
 0x1ed   : > { %829 = vmatpush.msra.mxu3 %v802_v19 }
 0x1ee   : > { %1268 = vmatmul.msk.f32.vlgmr.msra.gmra.mxu3 %vm810_vm10, %v803_v20 }
 0x271   : > { %v831_v22 = vpop.f32.mrf.mxu3 }
 0x272   : > { %v832_v23 = vadd.f32 %v831_v22, %v808_v21 }
 0x274   : > { %v834_v24 = vmax.f32 %v832_v23, 0.0 }
 0x276   : > { %836 = vst.msk [vmem:[#allocation3] sm:$0xf] %vm835_vm11, %v834_v24 }
 0x27d   : > { %v838_v25 = vld [vmem:[#allocation3] sm:$0xf] }
 0x27e   : > { %926 = vrot.lane.b32.xlu1 %v838_v25, %s1333_s29  ;;  %842 = vrot.lane.b32.xlu0 %v838_v25, %s1331_s27 }
 0x27f   : > { %896 = vrot.lane.b32.xlu2 %v838_v25, %s1332_s28  ;;  %1272 = vmatpush.msk.msrb.mxu1 %vm412_vm0, %v838_v25 }
 0x280   : > { %1273 = vmatmul.msk.f32.vlgmr.msrb.gmra.mxu1 %vm408_vm1, %v837_v27 }
 0x286   : > { %1046 = vrot.lane.b32.xlu1 %v838_v25, %s1337_s14  ;;  %956 = vrot.lane.b32.xlu0 %v838_v25, %s1334_s30  ;;  %s1236_s14 = sshll.u32 %s1575_s18, 2 }
 0x287   : > { %1016 = vrot.lane.b32.xlu2 %v838_v25, %s1336_s13  ;;  %s391_s26 = scalar_lea.vmem %s1572_s10, %s1236_s14 }
 0x28e   : > { %1107 = vperm.xlu1 %1316, %v1104_v26   ;;  %1076 = vrot.lane.b32.xlu0 %v838_v25, %s1338_s15 }
 0x28f   : > { %986 = vrot.lane.b32.xlu2 %v838_v25, %s1335_s12  ;;  %s395_s12 = scalar_lea.vmem %s1573_s11, %s1236_s14 }
 0x2d9   : > { %v897_v29 = vpop.permute.xlu2 %896 }
 0x2da   : > { %1275 = vmatpush.msk.msrb.mxu2 %vm412_vm0, %v897_v29 }
 0x2db   : > { %1276 = vmatmul.msk.f32.vlgmr.msrb.gmra.mxu2 %vm408_vm1, %v1274_v28 }
 0x2e1   : > { %v1017_v31 = vpop.permute.xlu2 %1016 }
 0x2e2   : > { %1287 = vmatpush.msk.msra.mxu2 %vm412_vm0, %v1017_v31 }
 0x2e3   : > { %1288 = vmatmul.msk.f32.vlgmr.msra.gmra.mxu2 %vm408_vm1, %v1286_v30 }
 0x2e9   : > { %v987_v33 = vpop.permute.xlu2 %986 }
 0x2ea   : > { %1284 = vmatpush.msk.msra.mxu1 %vm412_vm0, %v987_v33 }
 0x2eb   : > { %1285 = vmatmul.msk.f32.vlgmr.msra.gmra.mxu1 %vm408_vm1, %v1283_v32 }
 0x2f0   : > { %v927_v36 = vpop.permute.xlu1 %926  ;;  %v843_v37 = vpop.permute.xlu0 %842 }
 0x2f1   : > { %1270 = vmatpush.msk.msrb.mxu0 %vm412_vm0, %v843_v37  ;;  %1278 = vmatpush.msk.msrb.mxu3 %vm412_vm0, %v927_v36 }
 0x2f2   : > { %1271 = vmatmul.msk.f32.vlgmr.msrb.gmra.mxu0 %vm408_vm1, %v1269_v34  ;;  %1279 = vmatmul.msk.f32.vlgmr.msrb.gmra.mxu3 %vm408_vm1, %v1277_v35 }
 0x2f8   : > { %v1047_v40 = vpop.permute.xlu1 %1046  ;;  %v957_v41 = vpop.permute.xlu0 %956 }
 0x2f9   : > { %1281 = vmatpush.msk.msra.mxu0 %vm412_vm0, %v957_v41  ;;  %1290 = vmatpush.msk.msra.mxu3 %vm412_vm0, %v1047_v40 }
 0x2fa   : > { %1282 = vmatmul.msk.f32.vlgmr.msra.gmra.mxu0 %vm408_vm1, %v1280_v38  ;;  %1291 = vmatmul.msk.f32.vlgmr.msra.gmra.mxu3 %vm408_vm1, %v1289_v39 }
 0x2fd   : > { %v891_v44 = vpop.f32.mrf.mxu1 }
 0x300   : > { %v1077_v43 = vpop.permute.xlu0 %1076  ;;  %v1108_v61 = vpop.permute.xlu1 %1107 }
 0x301   : > { %1293 = vmatpush.msk.msrb.mxu0 %vm412_vm0, %v1077_v43 }
 0x302   : > { %1294 = vmatmul.msk.f32.vlgmr.msrb.gmra.mxu0 %vm408_vm1, %v1292_v42 }
 0x35e   : > { %v920_v47 = vpop.f32.mrf.mxu2 }
 0x366   : > { %v1040_v54 = vpop.f32.mrf.mxu2 }
 0x368   : > { %v1010_v52 = vpop.f32.mrf.mxu1 }
 0x36f   : > { %v866_v45 = vpop.f32.mrf.mxu0 }
 0x370   : > { %v892_v46 = vadd.f32 %v891_v44, %v866_v45 }
 0x372   : > { %v923_v48 = vadd.f32 %v920_v47, %v892_v46 }
 0x375   : > { %v950_v49 = vpop.f32.mrf.mxu3 }
 0x376   : > { %v953_v50 = vadd.f32 %v950_v49, %v923_v48 }
 0x377   : > { %v980_v51 = vpop.f32.mrf.mxu0 }
 0x378   : > { %v983_v53 = vadd.f32 %v980_v51, %v953_v50 }
 0x37a   : > { %v1013_v55 = vadd.f32 %v1010_v52, %v983_v53 }
 0x37c   : > { %v1043_v56 = vadd.f32 %v1040_v54, %v1013_v55 }
 0x37d   : > { %v1070_v57 = vpop.f32.mrf.mxu3 }
 0x37e   : > { %v1073_v58 = vadd.f32 %v1070_v57, %v1043_v56 }
 0x37f   : > { %v1100_v59 = vpop.f32.mrf.mxu0 }
 0x380   : > { %v1103_v60 = vadd.f32 %v1100_v59, %v1073_v58 }
 0x382   : > { %v1110_v62 = vadd.f32 %v1108_v61, %v1103_v60 }
 0x384   : > { %v1111_v0 = vmax.f32 %v1110_v62, 0.0 }
 0x386   : > { %v1116_v1 = vmul.f32 %v1317_v63, %v1111_v0 }
 0x388   : > { %v1118_v2 = vsel %vm1117_vm12, %v1116_v1, 0.0 }
 0x389   : > { %1119 = vadd.xlane.f32.xlu2 %v1118_v2 }
 0x3fc   : > { %v1120_v3 = vpop.xlane.xlu2 %1119 }
 0x3fd   : > { %v1121_v4 = vmul.f32 0.015625, %v1120_v3 }
 0x3ff   : > { %v1122_v5 = vsub.f32 0.0, %v1121_v4  ;;  %1144 = vst.msk [vmem:[%s395_s12 - $0x4] sm:$0xf0] %vm1143_vm13, %v1121_v4 }
 0x401   : > { %v1123_v6 = vmul.f32 1.442695, %v1122_v5 }
 0x403   : > { %1318 = vpow2.f32 %v1123_v6 }
 0x409   : > { %v1319_v7 = vpop.eup %1318 }
 0x40a   : > { %v1125_v8 = vadd.f32 1.0, %v1319_v7 }
 0x40c   : > { %1320 = vrcp.f32 %v1125_v8  ;;  %v1137_v12 = vand.u32 2147483648, %v1125_v8  ;;  %v1135_v14 = vand.u32 2147483647, %v1125_v8  ;;  %vm1131_vm15 = vweird.f32 %v1125_v8 }
 0x40e   : > { %v1138_v16 = vor.u32 1.1754944e-38, %v1137_v12  ;;  %vm1136_vm1 = vcmp.eq.f32.partialorder %v1135_v14, 8.507059e+37 }
 0x412   : > { %v1321_v9 = vpop.eup %1320 }
 0x413   : > { %v1127_v10 = vmul.f32 %v1321_v9, %v1125_v8  ;;  %vm1132_vm14 = vweird.f32 %v1321_v9 }
 0x414   : > { %vm1133_vm0 = vmor %vm1131_vm15, %vm1132_vm14 }
 0x415   : > { %v1128_v11 = vsub.f32 1.0, %v1127_v10 }
 0x417   : > { %v1129_v13 = vmul.f32 %v1321_v9, %v1128_v11 }
 0x419   : > { %v1130_v15 = vadd.f32 %v1321_v9, %v1129_v13 }
 0x41b   : > { %v1134_v17 = vsel %vm1133_vm0, %v1321_v9, %v1130_v15 }
 0x41c   : > { %v1139_v18 = vsel %vm1136_vm1, %v1138_v16, %v1134_v17 }
 0x41d   : > { %v1140_v19 = vmul.f32 3.0, %v1139_v18 }
 0x41f   : > { %1142 = vst.msk [vmem:[%s391_s26] sm:$0xf] %vm1141_vm2, %v1140_v19 }
 0x420 PF: > { %s22_s17 = sadd.s32 1, %s1328_s17  }
 0x421   : > { %p19_p4 = scmp.ge.s32.totalorder %s22_s17, 4  }
 0x423   :  { %21 = sbr.rel (!%p19_p4) target bundleno = 1 (0x1), region = 118 }

</bundles_post_ra>
